<compile_context>
chip_gen: v6e
topology: v6e:2x2x1
jax: 0.10.0
libtpu: 0.0.40
codegen_flags: <defaults>
</compile_context>

<pallas_src>
import math
import functools

import jax
import jax.numpy as jnp
from jax.experimental import pallas as pl
from jax.experimental.pallas import tpu as pltpu


def _cdiv(a: int, b: int) -> int:
    return -(-a // b)


def _round_up(x: int, m: int) -> int:
    return _cdiv(x, m) * m


def _pooler_kernel(x_ref, w_ref, b_ref, o_ref):
    # x_ref: (tm, H) CLS rows   w_ref: (H, tn)   b_ref: (1, tn) f32   o_ref: (tm, tn)
    acc = jnp.dot(x_ref[...], w_ref[...], preferred_element_type=jnp.float32)
    acc = acc + b_ref[...]                              # bias add in f32
    o_ref[...] = jnp.tanh(acc).astype(o_ref.dtype)      # tanh on EUP, cast out


@functools.partial(jax.jit, static_argnames=("tm_max", "tn_max"))
def mpnet_pooler(hidden_states, weight_t, bias, *, tm_max=256, tn_max=1024):
    """tanh(hidden_states[:, 0] @ weight_t + bias).

    hidden_states: [B, S, H]
    weight_t:      [H, I]  (transposed PyTorch nn.Linear weight; I == H).
                   Pass it pre-converted to bf16 offline for half the weight
                   bandwidth — it is streamed in its native dtype, f32 accum.
    bias:          [I]     (kept in f32 inside the kernel)
    returns:       [B, I]  in hidden_states.dtype
    """
    B, S, H = hidden_states.shape
    Hw, I = weight_t.shape
    assert Hw == H, "weight_t must be [hidden, hidden] (pre-transposed)"
    out_dtype = hidden_states.dtype
    x_item = jnp.dtype(hidden_states.dtype).itemsize
    w_item = jnp.dtype(weight_t.dtype).itemsize

    # ---- CLS-token access fused into the kernel (no slice/pad copy of x) ----
    if S == 1 or H % 128 == 0:
        # Free reshape (contiguous bitcast). A (tm, H) block at column-block 0
        # reads rows [i*tm, i*tm+tm) x columns [0, H) == hidden_states[:, 0, :].
        x2d = hidden_states.reshape(B, S * H)
    else:
        # TODO(synk): hidden sizes not a multiple of 128 fall back to an XLA
        # slice (extra B*H HBM round trip) to keep the block last-dim legal.
        x2d = hidden_states[:, 0, :]

    # Bias in f32 end-to-end (tiny: I*4 bytes).
    b2d = bias.astype(jnp.float32).reshape(1, I)

    # ---- Row (M) tiling: balanced tiles -> padding <= one sublane group. ----
    sublane = max(8, 32 // x_item)
    n_i = _cdiv(B, tm_max)
    tm = _round_up(_cdiv(B, n_i), sublane)
    if tm >= B:
        tm = B                      # single full-batch tile (block dim == array dim)
    n_i = _cdiv(B, tm)

    # ---- Column (I) tiling ----------------------------------------------------
    tn = I if I <= tn_max else tn_max

    def _tile_bytes(tn_):
        return (tm * H * x_item) + (H * tn_ * w_item) + (tn_ * 4) + (tm * tn_ * x_item)

    # VMEM guard (v7x: 64 MiB physical per core): shrink tn until the
    # double-buffered footprint is comfortably under 40 MiB.
    while 2 * _tile_bytes(tn) > 40 * 1024 * 1024 and tn % 256 == 0:
        tn //= 2
    n_j = _cdiv(I, tn)

    # Degenerate (1,1) grid: split the column dim so both v7x TensorCores get
    # work and the W DMA overlaps with matmul + bias + tanh.
    if n_i == 1 and n_j == 1 and tn % 256 == 0:
        tn //= 2
        n_j = 2

    # Grid: columns OUTER, rows INNER -> the W (and bias) column-tile block
    # index is constant across the inner loop, so W is DMA'd once total.
    grid = (n_j, n_i)

    vmem_limit = int(min(40 * 1024 * 1024,
                         max(32 * 1024 * 1024, int(2 * _tile_bytes(tn) * 1.25))))

    x_bytes = B * H * x_item * (1 if n_i == 1 else n_j)
    cost = pl.CostEstimate(
        flops=2 * B * H * I,
        transcendentals=B * I,
        bytes_accessed=int(x_bytes + H * I * w_item + I * 4 + B * I * x_item),
    )

    out = pl.pallas_call(
        _pooler_kernel,
        out_shape=jax.ShapeDtypeStruct((B, I), out_dtype),
        grid_spec=pltpu.PrefetchScalarGridSpec(
            num_scalar_prefetch=0,
            grid=grid,
            in_specs=[
                pl.BlockSpec((tm, H), lambda j, i: (i, 0)),   # CLS rows, full K
                pl.BlockSpec((H, tn), lambda j, i: (0, j)),   # W col tile (native dtype)
                pl.BlockSpec((1, tn), lambda j, i: (0, j)),   # f32 bias col tile
            ],
            out_specs=pl.BlockSpec((tm, tn), lambda j, i: (i, j)),
        ),
        compiler_params=pltpu.CompilerParams(
            dimension_semantics=("parallel", "parallel"),
            vmem_limit_bytes=vmem_limit,
        ),
        cost_estimate=cost,
    )(x2d, weight_t, b2d)

    return out


if __name__ == "__main__":
    # Small config consistent with MPNetPooler: Linear(hidden, hidden) + tanh.
    # hidden is a multiple of 128 so the fused (no-copy) CLS path is exercised.
    batch, seq, hidden_size = 2, 8, 256

    key = jax.random.PRNGKey(0)
    k_x, k_w, k_b = jax.random.split(key, 3)

    hidden_states = jax.random.normal(k_x, (batch, seq, hidden_size), dtype=jnp.float32)
    # PyTorch nn.Linear weight layout is [out, in]; pass it transposed.
    w_torch_layout = (
        jax.random.normal(k_w, (hidden_size, hidden_size), dtype=jnp.float32)
        * (1.0 / math.sqrt(hidden_size))
    )
    weight_t = w_torch_layout.T                              # [H, I]
    bias = jax.random.normal(k_b, (hidden_size,), dtype=jnp.float32) * 0.02

    # --- f32 weights ---------------------------------------------------------
    out = jax.block_until_ready(mpnet_pooler(hidden_states, weight_t, bias))
    first_tok = hidden_states[:, 0, :]
    ref = jnp.tanh(
        jnp.dot(first_tok, weight_t, precision=jax.lax.Precision.HIGHEST)
        + bias[None, :]
    )
    assert out.shape == (batch, hidden_size)
    assert bool(jnp.allclose(out, ref, atol=5e-5, rtol=1e-4)), "f32 mismatch vs reference"

    # --- bf16-streamed weights (f32 accumulation), per performance feedback ---
    weight_bf16 = weight_t.astype(jnp.bfloat16)              # one-time offline cast
    out_bf = jax.block_until_ready(mpnet_pooler(hidden_states, weight_bf16, bias))
    ref_bf = jnp.tanh(
        jnp.dot(first_tok, weight_bf16.astype(jnp.float32),
                precision=jax.lax.Precision.HIGHEST)
        + bias[None, :]
    )
    assert bool(jnp.allclose(out_bf, ref_bf, atol=1e-4, rtol=1e-3)), "bf16-weight mismatch"

    print("KERNEL_OK")
</pallas_src>

<mosaic_0001>
module attributes {stable_mosaic.version = 11 : i64} {
  func.func @_pooler_kernel(%arg0: i32, %arg1: i32, %arg2: memref<2x256xf32, #tpu.memory_space<vmem>>, %arg3: memref<256x128xf32, #tpu.memory_space<vmem>>, %arg4: memref<1x128xf32, #tpu.memory_space<vmem>>, %arg5: memref<2x128xf32, #tpu.memory_space<vmem>>) attributes {dimension_semantics = [#tpu.dimension_semantics<parallel>, #tpu.dimension_semantics<parallel>], iteration_bounds = array<i64: 2, 1>, scalar_prefetch = 0 : i64, scratch_operands = 0 : i64, tpu.core_type = #tpu.core_type<tc>, window_params = [{transform_indices = @transform_0, window_bounds = array<i64: 2, 256>}, {transform_indices = @transform_1, window_bounds = array<i64: 256, 128>}, {transform_indices = @transform_2, window_bounds = array<i64: 1, 128>}, {transform_indices = @transform_3, window_bounds = array<i64: 2, 128>}]} {
    %c0 = arith.constant 0 : index
    %c0_0 = arith.constant 0 : index
    %0 = vector.load %arg2[%c0, %c0_0] : memref<2x256xf32, #tpu.memory_space<vmem>>, vector<2x256xf32>
    %c0_1 = arith.constant 0 : index
    %c0_2 = arith.constant 0 : index
    %1 = vector.load %arg3[%c0_1, %c0_2] : memref<256x128xf32, #tpu.memory_space<vmem>>, vector<256x128xf32>
    %cst = arith.constant dense<0.000000e+00> : vector<2x128xf32>
    %2 = tpu.matmul %0, %1, %cst {dimension_numbers = #tpu.dot_dimension_numbers<[1], [0], [0], [1], [0, 0, 1, 1], [], []>} : vector<2x256xf32>, vector<256x128xf32>, vector<2x128xf32> -> vector<2x128xf32>
    %c0_3 = arith.constant 0 : index
    %c0_4 = arith.constant 0 : index
    %3 = vector.load %arg4[%c0_3, %c0_4] : memref<1x128xf32, #tpu.memory_space<vmem>>, vector<1x128xf32>
    %4 = vector.broadcast %3 : vector<1x128xf32> to vector<2x128xf32>
    %5 = arith.addf %2, %4 : vector<2x128xf32>
    %6 = math.tanh %5 : vector<2x128xf32>
    %c0_5 = arith.constant 0 : index
    %c0_6 = arith.constant 0 : index
    %7 = vector.load %arg5[%c0_5, %c0_6] : memref<2x128xf32, #tpu.memory_space<vmem>>, vector<2x128xf32>
    tpu.vector_store %arg5[%c0_5, %c0_6], %6 {strides = array<i32>} : memref<2x128xf32, #tpu.memory_space<vmem>>, vector<2x128xf32>,
    return
  }
  func.func @transform_0(%arg0: i32, %arg1: i32) -> (i32, i32) {
    %c0_i32 = arith.constant 0 : i32
    %c0_i32_0 = arith.constant 0 : i32
    return %arg1, %c0_i32 : i32, i32
  }
  func.func @transform_1(%arg0: i32, %arg1: i32) -> (i32, i32) {
    %c0_i32 = arith.constant 0 : i32
    %c0_i32_0 = arith.constant 0 : i32
    return %c0_i32, %arg0 : i32, i32
  }
  func.func @transform_2(%arg0: i32, %arg1: i32) -> (i32, i32) {
    %c0_i32 = arith.constant 0 : i32
    %c0_i32_0 = arith.constant 0 : i32
    return %c0_i32, %arg0 : i32, i32
  }
  func.func @transform_3(%arg0: i32, %arg1: i32) -> (i32, i32) {
    %c0_i32 = arith.constant 0 : i32
    return %arg1, %arg0 : i32, i32
  }
}

</mosaic_0001>

<bundles_post_ra>
// kernel: mpnet_pooler.1
= control target key start
LH: loop header
LB: loop body
LE: loop exit
PB: predicated region body
PF: predicated region fallthrough
CT: control target
= control target key end

     0   :  { %8 = vsyncpa [#allocation3], 0  ;;  %s911_s0 = inlined_call_operand.vmem [shape: f32[2,2048], index: 0, kind: input, shape index: {}]   ;;  %s912_s1 = inlined_call_operand.hbm [shape: f32[256,256], index: 1, kind: input, shape index: {}]   ;;  %s913_s2 = inlined_call_operand.vmem [shape: f32[1,256], index: 2, kind: input, shape index: {}]   ;;  %s914_s3 = inlined_call_operand.hbm [shape: f32[2,256], index: 3, kind: output, shape index: {}]  }
   0x1   :  { %10 = vsyncpa [#allocation3 + $0x1], 0 }
   0x2   :  { %11 = vsyncpa [#allocation4], 0 }
   0x3   :  { %13 = vsyncpa [#allocation4 + $0x1], 0  ;;  %s732_s12 = smov 0   ;;  %s734_s13 = smov 0  }
   0x4   :  { %s736_s14 = smov 0   ;;  %s738_s15 = smov 0  }
   0x5   :  { %s740_s16 = smov 0   ;;  %s742_s17 = smov 0  }
   0x6 LB: > { %s479_s18 = sadd.s32 4294967295, %s705_s17   ;;  %s480_s19 = sadd.s32 4294967294, %s705_s17   ;;  %s705_s17 = sphi %s742_s17, %s19_s17   ;;  %s701_s16 = sphi %s740_s16, %s925_s16   ;;  %s697_s15 = sphi %s738_s15, %s924_s15   ;;  %s693_s14 = sphi %s736_s14, %s923_s14   ;;  %s689_s13 = sphi %s734_s13, %s922_s13   ;;  %s685_s12 = sphi %s732_s12, %s921_s12  }
   0x7   : > { %s31_s20 = sadd.s32 1, %s701_s16  ;;  %s64_s21 = sadd.s32 1, %s693_s14 }
   0x8   : > { %p33_p0 = scmp.ge.s32.totalorder %s31_s20, 2  ;;  %p71_p1 = scmp.ne.s32.totalorder %s693_s14, %s689_s13 }
   0x9   : > { %p72_p2 = scmp.eq.s32.totalorder %s705_s17, 0  ;;  %p77_p3 = scmp.ne.s32.totalorder %s689_s13, %s685_s12 }
   0xa   : > { %s927_s20 = smov (%p33_p0, %s31_s20), 0  ;;  %p78_p5 = scmp.eq.s32.totalorder %s479_s18, 0 }
   0xb   : > { %p773_p4 = por %p72_p2, %p71_p1  ;;  %s61_s23 = ssub.s32 %s701_s16, %s927_s20 }
   0xc   : > { %p129_p6 = scmp.eq.s32.totalorder %s479_s18, 1  ;;  %p62_p7 = scmp.eq.s32.totalorder %s61_s23, 0 }
   0xd   : > { %p779_p8 = por %p78_p5, %p77_p3  ;;  %p135_p10 = scmp.eq.s32.totalorder %s480_s19, 1 }
   0xe   : > { %p783_p9 = por %p129_p6, %p71_p1  ;;  %p542_p13 = scmp.lt.s32.totalorder %s705_s17, 2 }
   0xf   : > { %s788_s26 = scalar_select %p62_p7, %s693_s14, %s64_s21  }
  0x10   : > { %p790_p11 = por %p135_p10, %p77_p3  ;;  %s163_s28 = sand.u32 1, %s693_s14  }
  0x11   : > { %s484_s29 = sshll.u32 %s163_s28, 8  ;;  %s485_s30 = sshll.u32 %s701_s16, 7 }
  0x12   : > { %s172_s6 = scalar_lea.hbm %s912_s1, %s485_s30  ;;  %s167_s7 = scalar_lea.vmem [#allocation2], %s484_s29 }
  0x13   : > { %s173_s8 = sshll.u32 %s167_s7, 4  ;;  %p803_p0 = pnand %p542_p13, %p773_p4  ;;  %s174_s8 = int_to_ptr.vmem [resolvable:$true] %s173_s8 }
  0x14   : > { %s164_s10 = scalar_lea.sflag [#allocation3], %s163_s28  ;;  %s610_s11 = scalar_lea.vmem %s174_s8, 4096 }
  0x15   : > { %p599_p1 = pneg %p803_p0  ;;  %p611_p2 = scmp.ne.s32.totalorder %s174_s8, %s610_s11 }
  0x16   : > { %s707_s18 = smov [#allocation2]  }
  0x17   : > { %p613_p3 = pnand %p611_p2, %p599_p1  ;;  %s615_s19 = sshll.u32 %s707_s18, 4  ;;  %s616_s19 = int_to_ptr.vmem [resolvable:$false] %s615_s19 }
  0x18   : > { %s617_s21 = scalar_lea.vmem %s616_s19, 8192  ;;  %p618_p6 = scmp.lt.s32.totalorder %s174_s8, %s616_s19 }
  0x19   : > { %p614_p5 = pneg %p613_p3  ;;  %p619_p7 = scmp.lt.s32.totalorder %s617_s21, %s610_s11 }
  0x1b   : > { %p620_p10 = por %p619_p7, %p618_p6 }
  0x1d   : > { %p621_p12 = pnand %p620_p10, %p614_p5 }
  0x1f   : > { %624 = shalt.err (!%p621_p12)
}
  0x20   : > { %s708_s22 = smov 256   ;;  %s709_s23 = smov 128  }
  0x21   : > { %s710_s28 = smov 8   ;;  %p486_p4 = scmp.ge.s32.totalorder %s705_s17, 1 }
  0x22   : > { %537 = dma.hbm_to_vmem [thread:$0]  (!%p803_p0), %s172_s6, 4096, %s174_s8, %s164_s10, %s708_s22, %s709_s23, %s710_s28  }
  0x23   : > { %p187_p13 = scmp.lt.s32.totalorder %s705_s17, 3 }
  0x25   : > { %p188_p1 = pnand %p486_p4, %p187_p13 }
  0x26   : > { %s814_s29 = sand.u32 (!%p188_p1), 1, %s689_s13  }
  0x27   : > { %191 = sbr.rel (%p188_p1) target bundleno = 304 (0x130), region = 32  ;;  %s487_s30 = sshll.u32 (!%p188_p1), %s814_s29, 8 }
  0x28   : > { %s194_s4 = scalar_lea.sflag (!%p188_p1), [#allocation3], %s814_s29  ;;  %s818_s5 = scalar_lea.vmem (!%p188_p1), [#allocation2], %s487_s30 }
  0x2c   : > { %676 = dma.done.wait (%p779_p8), %s194_s4, 4096  }
  0x2d   : > { %678 = vsyncadd (%p779_p8), %s194_s4, 4294963200  ;;  %v268_v0 = vld [vmem:[%s818_s5 + $0xf8] sm:$0xff]  ;;  %v267_v2 = vld [vmem:[%s818_s5 + $0xf0] sm:$0xff]  ;;  %p233_p8 = scmp.lt.s32.totalorder %s697_s15, 1  ;;  %s488_s11 = sshll.u32 %s814_s29, 1 }
  0x2e   : > { %v252_v1 = vld [vmem:[%s818_s5 + $0x78] sm:$0xff]  ;;  %495 = vmatprep.subr.mxu0 %v268_v0  ;;  %v251_v3 = vld [vmem:[%s818_s5 + $0x70] sm:$0xff]  ;;  %v266_v4 = vld [vmem:[%s818_s5 + $0xe8] sm:$0xff]  ;;  %s492_s18 = sshll.u32 %s697_s15, 5  ;;  %s227_s19 = scalar_lea.vmem [#allocation5], %s488_s11 }
  0x2f   : > { %496 = vmatpush3.msra.mxu0 %v252_v1  ;;  %v250_v5 = vld [vmem:[%s818_s5 + $0x68] sm:$0xff]  ;;  %v265_v6 = vld [vmem:[%s818_s5 + $0xe0] sm:$0xff]  ;;  %v264_v8 = vld [vmem:[%s818_s5 + $0xd8] sm:$0xff]  ;;  %s234_s7 = scalar_select %p233_p8, %s697_s15, 1 }
  0x30   : > { %497 = vmatprep.subr.mxu0 %v267_v2  ;;  %v249_v7 = vld [vmem:[%s818_s5 + $0x60] sm:$0xff]  ;;  %v248_v9 = vld [vmem:[%s818_s5 + $0x58] sm:$0xff]  ;;  %v263_v10 = vld [vmem:[%s818_s5 + $0xd0] sm:$0xff]  ;;  %s375_s21 = sshll.u32 %s227_s19, 4  ;;  %s869_s28 = scalar_lea.hbm %s914_s3, %s492_s18  ;;  %s376_s21 = int_to_ptr.vmem [resolvable:$true] %s375_s21 }
  0x31   : > { %498 = vmatpush3.msra.mxu0 %v251_v3  ;;  %v247_v11 = vld [vmem:[%s818_s5 + $0x50] sm:$0xff]  ;;  %v262_v12 = vld [vmem:[%s818_s5 + $0xc8] sm:$0xff]  ;;  %v490_v13 = vld.sshfl [vmem:[%s911_s0] sm:$0x33 pattern:$0x76325410]  ;;  %s235_s10 = scalar_lea.vmem %s913_s2, %s234_s7 }
  0x32   : > { %499 = vmatprep.subr.mxu0 %v266_v4  ;;  %v246_v14 = vld [vmem:[%s818_s5 + $0x48] sm:$0xff]  ;;  %v284_v15 = vcombine.high %v490_v13, %v490_v13  ;;  %v261_v16 = vld [vmem:[%s818_s5 + $0xc0] sm:$0xff]  ;;  %v260_v18 = vld [vmem:[%s818_s5 + $0xb8] sm:$0xff]  ;;  %s360_s30 = scalar_lea.sflag [#allocation4], %s814_s29  ;;  %s625_s4 = scalar_lea.vmem %s376_s21, 32 }
  0x33   : > { %500 = vmatpush3.msra.mxu0 %v250_v5  ;;  %v245_v17 = vld [vmem:[%s818_s5 + $0x40] sm:$0xff]  ;;  %v244_v19 = vld [vmem:[%s818_s5 + $0x38] sm:$0xff]  ;;  %v259_v20 = vld [vmem:[%s818_s5 + $0xb0] sm:$0xff]  ;;  %p626_p12 = scmp.ne.s32.totalorder %s376_s21, %s625_s4 }
  0x34   : > { %501 = vmatprep.subr.mxu0 %v265_v6  ;;  %351 = vmatprep.mubr.f32.mxu0 %v284_v15  ;;  %v243_v21 = vld [vmem:[%s818_s5 + $0x30] sm:$0xff]  ;;  %v258_v22 = vld [vmem:[%s818_s5 + $0xa8] sm:$0xff]  ;;  %v257_v24 = vld [vmem:[%s818_s5 + $0xa0] sm:$0xff] }
  0x35   : > { %502 = vmatpush3.msra.mxu0 %v249_v7  ;;  %v242_v23 = vld [vmem:[%s818_s5 + $0x28] sm:$0xff]  ;;  %v241_v25 = vld [vmem:[%s818_s5 + $0x20] sm:$0xff]  ;;  %v256_v26 = vld [vmem:[%s818_s5 + $0x98] sm:$0xff]  ;;  %p627_p0 = pnand %p626_p12, %p783_p9 }
  0x36   : > { %503 = vmatprep.subr.mxu0 %v264_v8  ;;  %v240_v27 = vld [vmem:[%s818_s5 + $0x18] sm:$0xff]  ;;  %v255_v28 = vld [vmem:[%s818_s5 + $0x90] sm:$0xff]  ;;  %v254_v30 = vld [vmem:[%s818_s5 + $0x88] sm:$0xff] }
  0x37   : > { %504 = vmatpush3.msra.mxu0 %v248_v9  ;;  %v239_v29 = vld [vmem:[%s818_s5 + $0x10] sm:$0xff]  ;;  %v238_v31 = vld [vmem:[%s818_s5 + $0x8] sm:$0xff]  ;;  %v253_v32 = vld [vmem:[%s818_s5 + $0x80] sm:$0xff]  ;;  %p628_p2 = pneg %p627_p0 }
  0x38   : > { %505 = vmatprep.subr.mxu0 %v263_v10  ;;  %v237_v33 = vld [vmem:[%s818_s5] sm:$0xff]  ;;  %s711_s5 = smov [#allocation5]  }
  0x39   : > { %506 = vmatpush3.msra.mxu0 %v247_v11  ;;  %v489_v35 = vld [vmem:[%s235_s10] ss:$0 sm:$0xff]  ;;  %s629_s24 = sshll.u32 %s711_s5, 4  ;;  %s630_s24 = int_to_ptr.vmem [resolvable:$false] %s629_s24 }
  0x3a   : > { %507 = vmatprep.subr.mxu0 %v262_v12  ;;  %s631_s15 = scalar_lea.vmem %s630_s24, 64  ;;  %p632_p3 = scmp.lt.s32.totalorder %s376_s21, %s630_s24 }
  0x3b   : > { %508 = vmatpush3.msra.mxu0 %v246_v14  ;;  %p633_p5 = scmp.lt.s32.totalorder %s631_s15, %s625_s4 }
  0x3c   : > { %509 = vmatprep.subr.mxu0 %v261_v16 }
  0x3d   : > { %510 = vmatpush3.msra.mxu0 %v245_v17  ;;  %p634_p6 = por %p633_p5, %p632_p3 }
  0x3e   : > { %511 = vmatprep.subr.mxu0 %v260_v18 }
  0x3f   : > { %512 = vmatpush3.msra.mxu0 %v244_v19  ;;  %p635_p7 = pnand %p634_p6, %p628_p2 }
  0x40   : > { %513 = vmatprep.subr.mxu0 %v259_v20 }
  0x41   : > { %514 = vmatpush3.msra.mxu0 %v243_v21 }
  0x42   : > { %515 = vmatprep.subr.mxu0 %v258_v22 }
  0x43   : > { %516 = vmatpush3.msra.mxu0 %v242_v23 }
  0x44   : > { %517 = vmatprep.subr.mxu0 %v257_v24 }
  0x45   : > { %518 = vmatpush3.msra.mxu0 %v241_v25 }
  0x46   : > { %519 = vmatprep.subr.mxu0 %v256_v26 }
  0x47   : > { %520 = vmatpush3.msra.mxu0 %v240_v27 }
  0x48   : > { %521 = vmatprep.subr.mxu0 %v255_v28 }
  0x49   : > { %522 = vmatpush3.msra.mxu0 %v239_v29 }
  0x4a   : > { %523 = vmatprep.subr.mxu0 %v254_v30 }
  0x4b   : > { %524 = vmatpush3.msra.mxu0 %v238_v31 }
  0x4c   : > { %525 = vmatprep.subr.mxu0 %v253_v32 }
  0x4d   : > { %526 = vmatpush3.msra.mxu0 %v237_v33 }
  0x4e   : > { %352 = vmatmul.mubr.f32.vlgmr.msra.gmra.mxu0 %v490_v13 }
 0x10e   : > { %v527_v34 = vpop.f32.mrf.mxu0 }
 0x110   : > { %v528_v36 = vpop.f32.mrf.mxu0 }
 0x111   : > { %v529_v37 = vadd.f32 %v528_v36, %v527_v34 }
 0x113   : > { %v354_v38 = vadd.f32 %v529_v37, %v489_v35 }
 0x115   : > { %595 = vtanh.f32 %v354_v38 }
 0x122   : > { %v596_v39 = vpop.eup %595 }
 0x123   : > { %358 = vst [vmem:[%s227_s19] sm:$0x3] %v596_v39 }
 0x124   : > { %638 = shalt.err (!%p635_p7)
}
 0x125   : > { %s639_s6 = scalar_lea.hbm %s869_s28, 32  ;;  %s643_s8 = scalar_lea.hbm %s914_s3, 64 }
 0x126   : > { %p640_p10 = scmp.ne.s32.totalorder %s869_s28, %s639_s6  ;;  %p644_p1 = scmp.lt.s32.totalorder %s869_s28, %s914_s3 }
 0x127   : > { %p645_p8 = scmp.lt.s32.totalorder %s643_s8, %s639_s6 }
 0x128   : > { %p641_p4 = pnand %p640_p10, %p783_p9 }
 0x129   : > { %p646_p12 = por %p645_p8, %p644_p1 }
 0x12a   : > { %p642_p13 = pneg %p641_p4 }
 0x12c   : > { %p647_p0 = pnand %p646_p12, %p642_p13 }
 0x12e   : > { %650 = shalt.err (!%p647_p0)
}
 0x12f   : > { %532 = dma.vmem_to_hbm [thread:$0]  (%p783_p9), %s376_s21, 32, %s869_s28, %s360_s30  }
 0x130 PF: > { %s387_s11 = sand.u32 1, %s685_s12   ;;  %p920_p2 = scmp.ge.s32.totalorder %s705_s17, 2 }
 0x131   : > { %s388_s18 = scalar_lea.sflag [#allocation4], %s387_s11 }
 0x132   : > { %p539_p3 = pnand %p920_p2, %p790_p11 }
 0x134   : > { %p540_p5 = pneg %p539_p3 }
 0x136   : > { %680 = dma.done.wait (%p540_p5), %s388_s18, 32  }
 0x137   : > { %682 = vsyncadd (%p540_p5), %s388_s18, 4294967264  ;;  %s19_s17 = sadd.s32 1, %s705_s17   ;;  %s921_s12 = smov %s689_s13 }
 0x138   : > { %p16_p6 = scmp.ge.s32.totalorder %s19_s17, 4   ;;  %s922_s13 = smov %s693_s14 }
 0x139   : > { %s923_s14 = smov %s788_s26  ;;  %s924_s15 = smov %s701_s16 }
 0x13a   : > { %s925_s16 = smov %s927_s20  ;;  %18 = sbr.rel (!%p16_p6) target bundleno = 6 (0x6), region = 83 }
 0x13f   :  { %393 = vsyncpa [#allocation3], 1 }
 0x140   :  { %395 = vsyncpa [#allocation3 + $0x1], 1 }
 0x141   :  { %396 = vsyncpa [#allocation4], 1 }
 0x142   :  { %398 = vsyncpa [#allocation4 + $0x1], 1 }

</bundles_post_ra>
